<compile_context>
chip_gen: v7x
topology: tpu7x:2x2x1
jax: 0.10.0
libtpu: 0.0.40
codegen_flags: <defaults>
</compile_context>

<pallas_src>
import functools

import jax
import jax.numpy as jnp
from jax.experimental import pallas as pl
from jax.experimental.pallas import tpu as pltpu


# ---------------------------------------------------------------------------
# Kernels
# ---------------------------------------------------------------------------
def _spatial_sum_kernel(x_ref, sum_ref):
    """Accumulate f32 channel sums over spatial tiles.

    x_ref:   (1, C, TS) tile of one batch element (input dtype)
    sum_ref: (1, C, 1) f32 accumulator, resident across the spatial grid axis
    """
    @pl.when(pl.program_id(1) == 0)
    def _():
        sum_ref[...] = jnp.zeros_like(sum_ref)

    # f32-accumulated reduction; does NOT materialize an f32 copy of the block.
    sum_ref[...] += jnp.sum(x_ref[...], axis=-1, keepdims=True, dtype=jnp.float32)


def _gate_kernel(sum_ref, wt_ref, b_ref, g_ref, *, inv_s):
    """Batched gate: sigmoid((sums * 1/S) @ W.T + b) for all batches at once."""
    avg = sum_ref[...][:, :, 0] * inv_s                                # (B, C) f32
    logits = jnp.dot(avg, wt_ref[...],
                     preferred_element_type=jnp.float32) + b_ref[...]  # (B, C)
    g_ref[...] = jax.nn.sigmoid(logits)[:, :, None]                    # (B, C, 1)


def _apply_gate_kernel(g_ref, x_ref, o_ref):
    """out = gate * x, multiply done in the input/output dtype (no f32 temps)."""
    g = g_ref[...].astype(o_ref.dtype)                                 # (1, C, 1)
    o_ref[...] = g * x_ref[...]                                        # (1, C, TS)


# ---------------------------------------------------------------------------
# Wrapper
# ---------------------------------------------------------------------------
def _choose_spatial_tile(S, C, itemsize, max_tile_bytes=2 << 20):
    """Largest multiple of 128 that divides S while keeping a (1, C, TS) block
    under ~2 MiB, so double-buffered in+out blocks fit the default scoped VMEM
    limit on every TPU generation (16/32/32 MiB on v5e/v6e/v7x)."""
    if S % 128 != 0:
        return S  # full-extent block (full-array exception to the 128 rule)
    max_ts = max(128, (max_tile_bytes // max(1, C * itemsize)) // 128 * 128)
    best = 128
    t = 128
    while t <= min(S, max_ts):
        if S % t == 0:
            best = t
        t += 128
    return best


def self_gating(x, weight, bias, *, spatial_tile=None):
    """x: (B, C, T, H, W); weight: (C, C) as in nn.Linear (out, in); bias: (C,)."""
    B, C, T, H, W = x.shape
    S = T * H * W
    x_flat = x.reshape(B, C, S)
    wt = weight.T                         # kernel computes avg @ W.T
    b2 = bias.reshape(1, C)

    ts = spatial_tile
    if ts is None or S % ts != 0 or (ts != S and ts % 128 != 0):
        ts = _choose_spatial_tile(S, C, x.dtype.itemsize)
    n_s = S // ts

    # Pass 1: per-(batch, channel) f32 sums over the flattened spatial axis.
    sums = pl.pallas_call(
        _spatial_sum_kernel,
        out_shape=jax.ShapeDtypeStruct((B, C, 1), jnp.float32),
        grid_spec=pltpu.PrefetchScalarGridSpec(
            num_scalar_prefetch=0,
            grid=(B, n_s),
            in_specs=[pl.BlockSpec((1, C, ts), lambda b, s: (b, 0, s))],
            out_specs=pl.BlockSpec((1, C, 1), lambda b, s: (b, 0, 0)),
        ),
        compiler_params=pltpu.CompilerParams(
            dimension_semantics=("parallel", "arbitrary")),
    )(x_flat)

    # Pass 2: one small batched matmul + sigmoid for the gate (all B at once,
    # so the CxC weights are pushed to the MXU only once).
    gate = pl.pallas_call(
        functools.partial(_gate_kernel, inv_s=float(1.0 / S)),
        out_shape=jax.ShapeDtypeStruct((B, C, 1), jnp.float32),
    )(sums, wt, b2)

    # Pass 3: broadcast multiply, tiled over (batch, spatial); both parallel.
    out_flat = pl.pallas_call(
        _apply_gate_kernel,
        out_shape=jax.ShapeDtypeStruct((B, C, S), x.dtype),
        grid_spec=pltpu.PrefetchScalarGridSpec(
            num_scalar_prefetch=0,
            grid=(B, n_s),
            in_specs=[
                pl.BlockSpec((1, C, 1), lambda b, s: (b, 0, 0)),   # gate: no re-DMA over s
                pl.BlockSpec((1, C, ts), lambda b, s: (b, 0, s)),  # x tile
            ],
            out_specs=pl.BlockSpec((1, C, ts), lambda b, s: (b, 0, s)),
        ),
        compiler_params=pltpu.CompilerParams(
            dimension_semantics=("parallel", "parallel")),
    )(gate, x_flat)
    # TODO(synk): consider input_output_aliases={1: 0} on pass 3 to donate x
    # when the caller no longer needs the activation (halves HBM residency).

    return out_flat.reshape(B, C, T, H, W)


# ---------------------------------------------------------------------------
# Reference + test
# ---------------------------------------------------------------------------
def _reference(x, weight, bias):
    avg = jnp.mean(x.astype(jnp.float32), axis=(2, 3, 4))
    g = jax.nn.sigmoid(avg @ weight.T + bias)
    return (g[:, :, None, None, None] * x.astype(jnp.float32)).astype(x.dtype)


if __name__ == "__main__":
    key = jax.random.PRNGKey(0)
    B, C, T, H, W = 2, 4, 4, 8, 8       # small 5-D input consistent with S3D-G

    kx, kw, kb = jax.random.split(key, 3)
    x = jax.random.normal(kx, (B, C, T, H, W), dtype=jnp.float32)

    # Deterministic nn.Linear(C, C) init: uniform(-1/sqrt(C), 1/sqrt(C))
    bound = 1.0 / jnp.sqrt(jnp.float32(C))
    weight = jax.random.uniform(kw, (C, C), minval=-bound, maxval=bound,
                                dtype=jnp.float32)
    bias = jax.random.uniform(kb, (C,), minval=-bound, maxval=bound,
                              dtype=jnp.float32)

    # spatial_tile=128 forces a multi-tile spatial grid (S = 256) so the
    # accumulator / tiled-multiply paths are exercised at this tiny test size.
    out = self_gating(x, weight, bias, spatial_tile=128)
    out = jax.block_until_ready(out)

    ref = _reference(x, weight, bias)
    assert out.shape == (B, C, T, H, W)
    assert jnp.allclose(out, ref, atol=1e-5, rtol=1e-5)
    print("KERNEL_OK")
</pallas_src>

<mosaic_0001>
module attributes {stable_mosaic.version = 11 : i64} {
  func.func @_spatial_sum_kernel(%arg0: i32, %arg1: i32, %arg2: memref<1x4x128xf32, #tpu.memory_space<vmem>>, %arg3: memref<1x4x1xf32, #tpu.memory_space<vmem>>) attributes {dimension_semantics = [#tpu.dimension_semantics<parallel>, #tpu.dimension_semantics<arbitrary>], iteration_bounds = array<i64: 2, 2>, scalar_prefetch = 0 : i64, scratch_operands = 0 : i64, tpu.core_type = #tpu.core_type<tc>, window_params = [{transform_indices = @transform_0, window_bounds = array<i64: 1, 4, 128>}, {transform_indices = @transform_1, window_bounds = array<i64: 1, 4, 1>}]} {
    %c0_i32 = arith.constant 0 : i32
    %0 = arith.cmpi eq, %arg1, %c0_i32 : i32
    %1 = arith.extui %0 : i1 to i32
    %c0_i32_0 = arith.constant 0 : i32
    %2 = arith.cmpi ne, %1, %c0_i32_0 : i32
    scf.if %2 {
      %cst_9 = arith.constant 0.000000e+00 : f32
      %9 = vector.broadcast %cst_9 : f32 to vector<1x4x1xf32>
      %c0_10 = arith.constant 0 : index
      %c0_11 = arith.constant 0 : index
      %c0_12 = arith.constant 0 : index
      %10 = vector.load %arg3[%c0_10, %c0_11, %c0_12] : memref<1x4x1xf32, #tpu.memory_space<vmem>>, vector<1x4x1xf32>
      tpu.vector_store %arg3[%c0_10, %c0_11, %c0_12], %9 {strides = array<i32>} : memref<1x4x1xf32, #tpu.memory_space<vmem>>, vector<1x4x1xf32>,
    } else {
    }
    %c0 = arith.constant 0 : index
    %c0_1 = arith.constant 0 : index
    %c0_2 = arith.constant 0 : index
    %3 = vector.load %arg3[%c0, %c0_1, %c0_2] : memref<1x4x1xf32, #tpu.memory_space<vmem>>, vector<1x4x1xf32>
    %c0_3 = arith.constant 0 : index
    %c0_4 = arith.constant 0 : index
    %c0_5 = arith.constant 0 : index
    %4 = vector.load %arg2[%c0_3, %c0_4, %c0_5] : memref<1x4x128xf32, #tpu.memory_space<vmem>>, vector<1x4x128xf32>
    %cst = arith.constant dense<0.000000e+00> : vector<1x4xf32>
    %5 = vector.multi_reduction <add>, %4, %cst [2] : vector<1x4x128xf32> to vector<1x4xf32>
    %6 = vector.shape_cast %5 : vector<1x4xf32> to vector<1x4x1xf32>
    %7 = arith.addf %3, %6 : vector<1x4x1xf32>
    %c0_6 = arith.constant 0 : index
    %c0_7 = arith.constant 0 : index
    %c0_8 = arith.constant 0 : index
    %8 = vector.load %arg3[%c0_6, %c0_7, %c0_8] : memref<1x4x1xf32, #tpu.memory_space<vmem>>, vector<1x4x1xf32>
    tpu.vector_store %arg3[%c0_6, %c0_7, %c0_8], %7 {strides = array<i32>} : memref<1x4x1xf32, #tpu.memory_space<vmem>>, vector<1x4x1xf32>,
    return
  }
  func.func @transform_0(%arg0: i32, %arg1: i32) -> (i32, i32, i32) {
    %c0_i32 = arith.constant 0 : i32
    %c0_i32_0 = arith.constant 0 : i32
    return %arg0, %c0_i32, %arg1 : i32, i32, i32
  }
  func.func @transform_1(%arg0: i32, %arg1: i32) -> (i32, i32, i32) {
    %c0_i32 = arith.constant 0 : i32
    %c0_i32_0 = arith.constant 0 : i32
    %c0_i32_1 = arith.constant 0 : i32
    return %arg0, %c0_i32, %c0_i32_0 : i32, i32, i32
  }
}

</mosaic_0001>

<bundles_post_ra>
// kernel: tpu_custom_call.1
= control target key start
LH: loop header
LB: loop body
LE: loop exit
PB: predicated region body
PF: predicated region fallthrough
CT: control target
= control target key end

     0   :  { %6 = vsyncpa [#allocation3], 0  ;;  %s587_s0 = inlined_call_operand.hbm [shape: f32[2,4,256], index: 0, kind: input, shape index: {}]   ;;  %s588_s1 = inlined_call_operand.vmem [shape: f32[2,4,1], index: 1, kind: output, shape index: {}]  }
   0x1   :  { %8 = vsyncpa [#allocation3 + $0x1], 0  ;;  %s436_s6 = smov 0   ;;  %s438_s7 = smov 0  }
   0x2   :  { %s440_s8 = smov 0   ;;  %s442_s9 = smov 0  }
   0x3   :  { %s444_s10 = smov 0   ;;  %s446_s11 = smov 0  }
   0x4   :  { %s448_s12 = smov 0   ;;  %s450_s13 = smov 0  }
   0x5 LB: > { %s241_s14 = sadd.s32 4294967295, %s422_s13   ;;  %s23_s15 = sadd.s32 1, %s414_s11  ;;  %s422_s13 = sphi %s450_s13, %s14_s13   ;;  %s418_s12 = sphi %s448_s12, %s600_s12   ;;  %s414_s11 = sphi %s446_s11, %s599_s11   ;;  %s410_s10 = sphi %s444_s10, %s598_s10   ;;  %s406_s9 = sphi %s442_s9, %s597_s9   ;;  %s402_s8 = sphi %s440_s8, %s596_s8   ;;  %s398_s7 = sphi %s438_s7, %s595_s7   ;;  %s394_s6 = sphi %s436_s6, %s594_s6  }
   0x6   : > { %p24_p0 = scmp.ge.s32.totalorder %s23_s15, 2  ;;  %s26_s16 = sadd.s32 1, %s418_s12 }
   0x7   : > { %s35_s17 = sadd.s32 1, %s402_s8  ;;  %p42_p1 = scmp.ne.s32.totalorder %s402_s8, %s398_s7 }
   0x8   : > { %s602_s15 = smov (%p24_p0, %s23_s15), 0  ;;  %s604_s16 = smov (!%p24_p0, %s26_s16), %s418_s12 }
   0x9   : > { %s31_s18 = ssub.s32 %s414_s11, %s602_s15  ;;  %p43_p2 = scmp.eq.s32.totalorder %s422_s13, 0 }
   0xa   : > { %p28_p3 = scmp.ge.s32.totalorder %s604_s16, 2  ;;  %p48_p4 = scmp.ne.s32.totalorder %s398_s7, %s394_s6 }
   0xb   : > { %p487_p5 = por %p43_p2, %p42_p1  ;;  %p49_p6 = scmp.eq.s32.totalorder %s241_s14, 0 }
   0xc   : > { %s606_s16 = smov (%p28_p3, %s604_s16), 0  ;;  %p260_p8 = scmp.lt.s32.totalorder %s422_s13, 4 }
   0xd   : > { %p493_p7 = por %p49_p6, %p48_p4  ;;  %s30_s21 = ssub.s32 %s418_s12, %s606_s16 }
   0xe   : > { %s32_s22 = sor.u32 %s31_s18, %s30_s21  ;;  %s98_s23 = sand.u32 1, %s402_s8  }
   0xf   : > { %p33_p9 = scmp.eq.s32.totalorder %s32_s22, 0  ;;  %s245_s24 = sshll.u32 %s98_s23, 2 }
  0x10   : > { %s246_s25 = sshll.u32 %s418_s12, 1  ;;  %s102_s29 = scalar_lea.vmem [#allocation2], %s245_s24 }
  0x11   : > { %s503_s26 = scalar_select %p33_p9, %s402_s8, %s35_s17  }
  0x12   : > { %s107_s27 = sadd.s32 %s414_s11, %s246_s25  ;;  %s111_s30 = sshll.u32 %s102_s29, 4  ;;  %s511_s30 = int_to_ptr.vmem [resolvable:$true] %s111_s30 }
  0x13   : > { %s247_s28 = sshll.u32 %s107_s27, 6  ;;  %p517_p10 = pnand %p260_p8, %p487_p5 }
  0x14   : > { %s509_s4 = scalar_lea.hbm %s587_s0, %s247_s28  ;;  %s99_s6 = scalar_lea.sflag [#allocation3], %s98_s23 }
  0x15   : > { %s326_s14 = scalar_lea.hbm %s509_s4, 64  ;;  %p328_p0 = pneg %p517_p10 }
  0x16   : > { %p327_p13 = scmp.ne.s32.totalorder %s509_s4, %s326_s14  ;;  %s331_s19 = scalar_lea.hbm %s587_s0, 256 }
  0x17   : > { %p332_p3 = scmp.lt.u32.totalorder %s509_s4, %s587_s0  ;;  %p333_p4 = scmp.lt.u32.totalorder %s331_s19, %s326_s14 }
  0x18   : > { %p329_p1 = pnand %p328_p0, %p327_p13  ;;  %p335_p6 = scmp.lt.u32.totalorder %s326_s14, %s509_s4 }
  0x19   : > { %p334_p5 = por %p333_p4, %p332_p3 }
  0x1a   : > { %p330_p2 = pneg %p329_p1 }
  0x1b   : > { %p336_p8 = por %p335_p6, %p334_p5 }
  0x1d   : > { %p337_p9 = pnand %p336_p8, %p330_p2 }
  0x1f   : > { %340 = shalt.err (!%p337_p9)
}
  0x20   : > { %s341_s23 = scalar_lea.vmem %s511_s30, 64  ;;  %s424_s24 = smov [#allocation2]  }
  0x21   : > { %p342_p13 = scmp.ne.s32.totalorder %s511_s30, %s341_s23  ;;  %s346_s25 = sshll.u32 %s424_s24, 4  ;;  %s347_s25 = int_to_ptr.vmem [resolvable:$false] %s346_s25 }
  0x22   : > { %s348_s27 = scalar_lea.vmem %s347_s25, 128  ;;  %p349_p12 = scmp.lt.s32.totalorder %s511_s30, %s347_s25 }
  0x23   : > { %p344_p1 = pnand %p342_p13, %p328_p0  ;;  %p350_p3 = scmp.lt.s32.totalorder %s348_s27, %s341_s23 }
  0x25   : > { %p345_p11 = pneg %p344_p1  ;;  %p351_p4 = por %p350_p3, %p349_p12 }
  0x27   : > { %p352_p5 = pnand %p351_p4, %p345_p11 }
  0x29   : > { %355 = shalt.err (!%p352_p5)
}
  0x2a   : > { %259 = dma.hbm_to_vmem [thread:$0]  (!%p517_p10), %s509_s4, 64, %s511_s30, %s99_s6  }
  0x2b   : > { %p592_p2 = scmp.lt.s32.totalorder %s422_s13, 5  ;;  %p593_p6 = scmp.ge.s32.totalorder %s422_s13, 1 }
  0x2d   : > { %p117_p0 = pnand %p593_p6, %p592_p2 }
  0x2e   : > { %s122_s28 = sand.u32 (!%p117_p0), 1, %s398_s7  }
  0x2f   : > { %120 = sbr.rel (%p117_p0) target bundleno = 211 (0xd3), region = 24  ;;  %s249_s29 = sshll.u32 (!%p117_p0), %s122_s28, 2 }
  0x30   : > { %s123_s2 = scalar_lea.sflag (!%p117_p0), [#allocation3], %s122_s28  ;;  %s126_s3 = scalar_lea.vmem (!%p117_p0), [#allocation2], %s249_s29 }
  0x36   : > { %389 = dma.done.wait (%p493_p7), %s123_s2, 64  }
  0x37   : > { %391 = vsyncadd (%p493_p7), %s123_s2, 4294967232  ;;  %p144_p11 = scmp.lt.s32.totalorder %s410_s10, 1  ;;  %p251_p10 = scmp.ne.s32.totalorder %s406_s9, 0 }
  0x38   : > { %vm152_vm0 = vcmask (!%p251_p10), 3072   ;;  %v425_v0 = vmov (!%p251_p10), 0.0  }
  0x39   : > { %s608_s10 = smov (!%p144_p11, %s410_s10), 1  ;;  %151 = sbr.rel (%p251_p10) target bundleno = 64 (0x40), region = 32 }
  0x3a   : > { %s250_s30 = sshll.u32 %s608_s10, 2 }
  0x3b   : > { %s147_s6 = scalar_lea.vmem %s588_s1, %s250_s30 }
  0x3c   : > { %153 = vst.msk [vmem:[%s147_s6] sm:$0xf] (!%p251_p10), %vm152_vm0, %v425_v0 }
  0x40 PF: > { %v155_v1 = vld [vmem:[%s126_s3] sm:$0xf]  ;;  %vm156_vm1 = vcmask 1043456   ;;  %vm161_vm2 = vcmask 3072  }
  0x41   : > { %v157_v2 = vsel %vm156_vm1, %v155_v1, 0.0 }
  0x42   : > { %158 = vadd.xlane.f32.xlu0 %v157_v2 }
  0x43   : > { %v154_v3 = vld [vmem:[%s147_s6] sm:$0xf] }
  0xcf   : > { %v159_v4 = vpop.xlane.xlu0 %158 }
  0xd0   : > { %v160_v5 = vadd.f32 %v159_v4, %v154_v3 }
  0xd2   : > { %162 = vst.msk [vmem:[%s147_s6] sm:$0xf] %vm161_vm2, %v160_v5 }
  0xd3 PF: > { %s14_s13 = sadd.s32 1, %s422_s13   ;;  %s594_s6 = smov %s398_s7 }
  0xd4   : > { %p11_p7 = scmp.ge.s32.totalorder %s14_s13, 6   ;;  %s595_s7 = smov %s402_s8 }
  0xd5   : > { %s596_s8 = smov %s503_s26  ;;  %s597_s9 = smov %s414_s11 }
  0xd6   : > { %s598_s10 = smov %s418_s12  ;;  %s599_s11 = smov %s602_s15 }
  0xd7   : > { %s600_s12 = smov %s606_s16  ;;  %13 = sbr.rel (!%p11_p7) target bundleno = 5 (0x5), region = 68 }
  0xde   :  { %182 = vsyncpa [#allocation3], 1 }
  0xdf   :  { %184 = vsyncpa [#allocation3 + $0x1], 1 }

</bundles_post_ra>
